<compile_context>
chip_gen: v7x
topology: tpu7x:2x2x1
jax: 0.10.0
libtpu: 0.0.40
codegen_flags: <defaults>
</compile_context>

<pallas_src>
import functools

import jax
import jax.numpy as jnp
from jax.experimental import pallas as pl
from jax.experimental.pallas import tpu as pltpu


# Packed-parameter layout inside a single (32, 128) f32 VMEM-resident buffer:
#   [0:16,  0:3 ]  W1  (16, 3)   fc1 weight, PyTorch (out, in) layout
#   [0:16,  4:5 ]  b1  (16, 1)
#   [0:32,  8:24]  W2  (32, 16)  fc2 weight
#   [0:32, 24:25]  b2  (32, 1)
#   [0:32, 32:33]  W3  (32, 1)   fc3 weight stored as a column
#   [0:1,  40:41]  b3  (1, 1)
_P_ROWS, _P_COLS = 32, 128
_LANES = 128


def mlp_kernel(x_ref, p_ref, o_ref):
    # x_ref: (3, tm) batch-on-lane; p_ref: (32, 128) packed params; o_ref: (1, tm)

    # ---- fc1: 3 -> 16. K=3 is far too small for the MXU; unrolled VPU
    # broadcast-FMA over the 3 input features (weight columns splat across lanes,
    # x rows splat across sublanes).
    x0 = x_ref[0:1, :]
    x1 = x_ref[1:2, :]
    x2 = x_ref[2:3, :]
    h1 = (p_ref[0:16, 0:1] * x0
          + p_ref[0:16, 1:2] * x1
          + p_ref[0:16, 2:3] * x2
          + p_ref[0:16, 4:5])                              # (16, tm)
    h1 = jnp.maximum(h1, 0.0)                              # ReLU

    # ---- fc2: 16 -> 32 on the MXU; batch stays on the wide dimension.
    w2 = p_ref[0:32, 8:24]                                 # (32, 16)
    b2 = p_ref[0:32, 24:25]                                # (32, 1)
    h2 = jnp.dot(w2, h1, preferred_element_type=jnp.float32) + b2
    h2 = jnp.maximum(h2, 0.0)                              # ReLU, (32, tm)

    # ---- fc3: 32 -> 1. Single output channel: multiply + sublane reduce
    # (VPU + XLU) instead of a degenerate N=1 matmul.
    w3 = p_ref[0:32, 32:33]                                # (32, 1)
    b3 = p_ref[0:1, 40:41]                                 # (1, 1)
    h3 = jnp.sum(w3 * h2, axis=0, keepdims=True) + b3      # (1, tm)

    o_ref[...] = jnp.tanh(h3).astype(o_ref.dtype)          # Tanh


def _round_up(a, b):
    return ((a + b - 1) // b) * b


def _cdiv(a, b):
    return (a + b - 1) // b


def _choose_tiling(n, tm_max, min_grid):
    """Pick (tile_lanes, grid_steps, padded_batch).

    - tile as large as possible (<= tm_max) to amortize per-step overhead,
    - >= min_grid (and even) steps once the batch is big enough, so a v7x
      megacore actually splits the work across both TensorCores,
    - tm derived from ceil(n128/steps) so padding waste is at most one
      128-lane group per step (no round_up(N, tm) blow-up).
    """
    n128 = _round_up(max(n, 1), _LANES)
    steps = _cdiv(n128, tm_max)
    if n128 >= min_grid * _LANES:
        steps = max(steps, min_grid)
    if steps > 1 and steps % 2:
        steps += 1
    tm = _round_up(_cdiv(n128, steps), _LANES)
    return tm, steps, tm * steps


def pack_params(params):
    """params holds PyTorch-layout weights: w{k}: (out, in), b{k}: (out,)."""
    p = jnp.zeros((_P_ROWS, _P_COLS), jnp.float32)
    p = p.at[0:16, 0:3].set(params["w1"].astype(jnp.float32))
    p = p.at[0:16, 4:5].set(params["b1"].reshape(16, 1).astype(jnp.float32))
    p = p.at[0:32, 8:24].set(params["w2"].astype(jnp.float32))
    p = p.at[0:32, 24:25].set(params["b2"].reshape(32, 1).astype(jnp.float32))
    p = p.at[0:32, 32:33].set(params["w3"].reshape(32, 1).astype(jnp.float32))
    p = p.at[0:1, 40:41].set(params["b3"].reshape(1, 1).astype(jnp.float32))
    return p


@functools.partial(jax.jit, static_argnames=("tm_max", "min_grid"))
def transformer_net_forward(x, packed_params, *, tm_max=32768, min_grid=2):
    """x: (N, 3) float32. packed_params: (32, 128) buffer from pack_params()."""
    N, d_in = x.shape
    assert d_in == 3
    assert tm_max % _LANES == 0

    tm, steps, n_pad = _choose_tiling(N, tm_max, min_grid)

    # Batch-on-lane layout. Under jit the transpose + pad fuse into the single
    # copy that feeds the kernel; padded columns are zero (tanh-safe) and sliced off.
    x_t = jnp.pad(x.astype(jnp.float32).T, ((0, 0), (0, n_pad - N)))   # (3, n_pad)

    cost = pl.CostEstimate(
        flops=2 * n_pad * (3 * 16 + 16 * 32 + 32 * 1),
        transcendentals=n_pad,                                   # one tanh per row
        bytes_accessed=(3 * n_pad + n_pad + _P_ROWS * _P_COLS) * 4,
    )

    out_t = pl.pallas_call(
        mlp_kernel,
        out_shape=jax.ShapeDtypeStruct((1, n_pad), jnp.float32),
        grid=(steps,),
        in_specs=[
            pl.BlockSpec((3, tm), lambda i: (0, i)),              # x tile (batch on lanes)
            pl.BlockSpec((_P_ROWS, _P_COLS), lambda i: (0, 0)),   # packed params (resident)
        ],
        out_specs=pl.BlockSpec((1, tm), lambda i: (0, i)),        # lane-dense output
        compiler_params=pltpu.CompilerParams(
            dimension_semantics=("parallel",),                    # megacore split on v7x
        ),
        cost_estimate=cost,
    )(x_t, packed_params)

    return out_t[0, :N].reshape(N, 1)


def init_params(key):
    """Deterministic init mirroring torch.nn.Linear: weight (out, in), bias (out,)."""
    ks = jax.random.split(key, 6)

    def linear(kw, kb, fan_in, fan_out):
        bound = 1.0 / jnp.sqrt(fan_in)
        w = jax.random.uniform(kw, (fan_out, fan_in), jnp.float32, -bound, bound)
        b = jax.random.uniform(kb, (fan_out,), jnp.float32, -bound, bound)
        return w, b

    w1, b1 = linear(ks[0], ks[1], 3, 16)
    w2, b2 = linear(ks[2], ks[3], 16, 32)
    w3, b3 = linear(ks[4], ks[5], 32, 1)
    return {"w1": w1, "b1": b1, "w2": w2, "b2": b2, "w3": w3, "b3": b3}


def reference_forward(x, params):
    h1 = jnp.maximum(x @ params["w1"].T + params["b1"], 0.0)
    h2 = jnp.maximum(h1 @ params["w2"].T + params["b2"], 0.0)
    return jnp.tanh(h2 @ params["w3"].T + params["b3"])


if __name__ == "__main__":
    key = jax.random.PRNGKey(0)
    k_param, k_x1, k_x2, k_x3 = jax.random.split(key, 4)

    params = init_params(k_param)
    packed = pack_params(params)

    # Small batch of rows with 3 features (single-tile, single-step grid path).
    x = jax.random.normal(k_x1, (16, 3), jnp.float32)
    out = jax.block_until_ready(transformer_net_forward(x, packed))
    ref = reference_forward(x, params)
    assert out.shape == (16, 1)
    assert jnp.allclose(out, ref, atol=1e-5, rtol=1e-5)

    # Batch not a multiple of 8/128 exercises the lane-padded tail path.
    x2 = jax.random.normal(k_x2, (13, 3), jnp.float32)
    out2 = jax.block_until_ready(transformer_net_forward(x2, packed))
    ref2 = reference_forward(x2, params)
    assert out2.shape == (13, 1)
    assert jnp.allclose(out2, ref2, atol=1e-5, rtol=1e-5)

    # Batch >= 256 exercises the multi-step ("parallel"/megacore) grid and the
    # padding-minimizing tile selection.
    x3 = jax.random.normal(k_x3, (300, 3), jnp.float32)
    out3 = jax.block_until_ready(transformer_net_forward(x3, packed))
    ref3 = reference_forward(x3, params)
    assert out3.shape == (300, 1)
    assert jnp.allclose(out3, ref3, atol=1e-5, rtol=1e-5)

    print("KERNEL_OK")
</pallas_src>

<mosaic_0001>
module attributes {stable_mosaic.version = 11 : i64} {
  func.func @mlp_kernel(%arg0: i32, %arg1: memref<3x128xf32, #tpu.memory_space<vmem>>, %arg2: memref<32x128xf32, #tpu.memory_space<vmem>>, %arg3: memref<1x128xf32, #tpu.memory_space<vmem>>) attributes {dimension_semantics = [#tpu.dimension_semantics<parallel>], iteration_bounds = array<i64: 1>, scalar_prefetch = 0 : i64, scratch_operands = 0 : i64, tpu.core_type = #tpu.core_type<tc>, window_params = [{transform_indices = @transform_0, window_bounds = array<i64: 3, 128>}, {pipeline_mode = #tpu.pipeline_mode<synchronous>, transform_indices = @transform_1, window_bounds = array<i64: 32, 128>}, {transform_indices = @transform_2, window_bounds = array<i64: 1, 128>}]} {
    %c0 = arith.constant 0 : index
    %c0_0 = arith.constant 0 : index
    %0 = vector.load %arg1[%c0, %c0_0] : memref<3x128xf32, #tpu.memory_space<vmem>>, vector<1x128xf32>
    %c1 = arith.constant 1 : index
    %c0_1 = arith.constant 0 : index
    %1 = vector.load %arg1[%c1, %c0_1] : memref<3x128xf32, #tpu.memory_space<vmem>>, vector<1x128xf32>
    %c2 = arith.constant 2 : index
    %c0_2 = arith.constant 0 : index
    %2 = vector.load %arg1[%c2, %c0_2] : memref<3x128xf32, #tpu.memory_space<vmem>>, vector<1x128xf32>
    %c0_3 = arith.constant 0 : index
    %c0_4 = arith.constant 0 : index
    %3 = vector.load %arg2[%c0_3, %c0_4] : memref<32x128xf32, #tpu.memory_space<vmem>>, vector<16x1xf32>
    %4 = vector.broadcast %3 : vector<16x1xf32> to vector<16x128xf32>
    %5 = vector.broadcast %0 : vector<1x128xf32> to vector<16x128xf32>
    %6 = arith.mulf %4, %5 : vector<16x128xf32>
    %c0_5 = arith.constant 0 : index
    %c1_6 = arith.constant 1 : index
    %7 = vector.load %arg2[%c0_5, %c1_6] : memref<32x128xf32, #tpu.memory_space<vmem>>, vector<16x1xf32>
    %8 = vector.broadcast %7 : vector<16x1xf32> to vector<16x128xf32>
    %9 = vector.broadcast %1 : vector<1x128xf32> to vector<16x128xf32>
    %10 = arith.mulf %8, %9 : vector<16x128xf32>
    %11 = arith.addf %6, %10 : vector<16x128xf32>
    %c0_7 = arith.constant 0 : index
    %c2_8 = arith.constant 2 : index
    %12 = vector.load %arg2[%c0_7, %c2_8] : memref<32x128xf32, #tpu.memory_space<vmem>>, vector<16x1xf32>
    %13 = vector.broadcast %12 : vector<16x1xf32> to vector<16x128xf32>
    %14 = vector.broadcast %2 : vector<1x128xf32> to vector<16x128xf32>
    %15 = arith.mulf %13, %14 : vector<16x128xf32>
    %16 = arith.addf %11, %15 : vector<16x128xf32>
    %c0_9 = arith.constant 0 : index
    %c4 = arith.constant 4 : index
    %17 = vector.load %arg2[%c0_9, %c4] : memref<32x128xf32, #tpu.memory_space<vmem>>, vector<16x1xf32>
    %18 = vector.broadcast %17 : vector<16x1xf32> to vector<16x128xf32>
    %19 = arith.addf %16, %18 : vector<16x128xf32>
    %cst = arith.constant 0.000000e+00 : f32
    %20 = vector.broadcast %cst : f32 to vector<16x128xf32>
    %21 = arith.maximumf %19, %20 : vector<16x128xf32>
    %c0_10 = arith.constant 0 : index
    %c8 = arith.constant 8 : index
    %22 = vector.load %arg2[%c0_10, %c8] : memref<32x128xf32, #tpu.memory_space<vmem>>, vector<32x16xf32>
    %c0_11 = arith.constant 0 : index
    %c24 = arith.constant 24 : index
    %23 = vector.load %arg2[%c0_11, %c24] : memref<32x128xf32, #tpu.memory_space<vmem>>, vector<32x1xf32>
    %cst_12 = arith.constant dense<0.000000e+00> : vector<32x128xf32>
    %24 = tpu.matmul %22, %21, %cst_12 {dimension_numbers = #tpu.dot_dimension_numbers<[1], [0], [0], [1], [0, 0, 1, 1], [], []>} : vector<32x16xf32>, vector<16x128xf32>, vector<32x128xf32> -> vector<32x128xf32>
    %25 = vector.broadcast %23 : vector<32x1xf32> to vector<32x128xf32>
    %26 = arith.addf %24, %25 : vector<32x128xf32>
    %cst_13 = arith.constant 0.000000e+00 : f32
    %27 = vector.broadcast %cst_13 : f32 to vector<32x128xf32>
    %28 = arith.maximumf %26, %27 : vector<32x128xf32>
    %c0_14 = arith.constant 0 : index
    %c32 = arith.constant 32 : index
    %29 = vector.load %arg2[%c0_14, %c32] : memref<32x128xf32, #tpu.memory_space<vmem>>, vector<32x1xf32>
    %c0_15 = arith.constant 0 : index
    %c40 = arith.constant 40 : index
    %30 = vector.load %arg2[%c0_15, %c40] : memref<32x128xf32, #tpu.memory_space<vmem>>, vector<1x1xf32>
    %31 = vector.broadcast %29 : vector<32x1xf32> to vector<32x128xf32>
    %32 = arith.mulf %31, %28 : vector<32x128xf32>
    %cst_16 = arith.constant dense<0.000000e+00> : vector<128xf32>
    %33 = vector.multi_reduction <add>, %32, %cst_16 [0] : vector<32x128xf32> to vector<128xf32>
    %34 = vector.shape_cast %33 : vector<128xf32> to vector<1x128xf32>
    %35 = vector.broadcast %30 : vector<1x1xf32> to vector<1x128xf32>
    %36 = arith.addf %34, %35 : vector<1x128xf32>
    %37 = math.tanh %36 : vector<1x128xf32>
    %c0_17 = arith.constant 0 : index
    %c0_18 = arith.constant 0 : index
    %38 = vector.load %arg3[%c0_17, %c0_18] : memref<1x128xf32, #tpu.memory_space<vmem>>, vector<1x128xf32>
    tpu.vector_store %arg3[%c0_17, %c0_18], %37 {strides = array<i32>} : memref<1x128xf32, #tpu.memory_space<vmem>>, vector<1x128xf32>,
    return
  }
  func.func @transform_0(%arg0: i32) -> (i32, i32) {
    %c0_i32 = arith.constant 0 : i32
    %c0_i32_0 = arith.constant 0 : i32
    return %c0_i32, %arg0 : i32, i32
  }
  func.func @transform_1(%arg0: i32) -> (i32, i32) {
    %c0_i32 = arith.constant 0 : i32
    %c0_i32_0 = arith.constant 0 : i32
    %c0_i32_1 = arith.constant 0 : i32
    return %c0_i32, %c0_i32_0 : i32, i32
  }
  func.func @transform_2(%arg0: i32) -> (i32, i32) {
    %c0_i32 = arith.constant 0 : i32
    %c0_i32_0 = arith.constant 0 : i32
    return %c0_i32, %arg0 : i32, i32
  }
}

</mosaic_0001>

<bundles_post_ra>
// kernel: transformer_net_forward.1
= control target key start
LH: loop header
LB: loop body
LE: loop exit
PB: predicated region body
PF: predicated region fallthrough
CT: control target
= control target key end

     0   :  { %7 = vsyncpa [#allocation3], 0  ;;  %s340_s9 = smov [#allocation2]   ;;  %s390_s0 = inlined_call_operand.vmem [shape: f32[3,128], index: 0, kind: input, shape index: {}]   ;;  %s391_s1 = inlined_call_operand.hbm [shape: f32[32,128], index: 1, kind: input, shape index: {}]   ;;  %s392_s2 = inlined_call_operand.vmem [shape: f32[1,128], index: 2, kind: output, shape index: {}]  }
   0x1   :  { %s15_s10 = sshll.u32 %s340_s9, 4  ;;  %s316_s13 = scalar_lea.hbm %s391_s1, 512  ;;  %s16_s10 = int_to_ptr.vmem [resolvable:$true] %s15_s10 }
   0x2   :  { %p317_p0 = scmp.ne.s32.totalorder %s391_s1, %s316_s13  ;;  %p320_p1 = scmp.lt.u32.totalorder %s316_s13, %s391_s1 }
   0x4   :  { %p322_p2 = pnand %p320_p1, %p317_p0 }
   0x6   :  { %325 = shalt.err (!%p322_p2)
}
   0x7   :  { %s326_s18 = scalar_lea.vmem %s16_s10, 512  ;;  %p331_p4 = scmp.lt.s32.totalorder %s16_s10, %s16_s10 }
   0x8   :  { %p327_p3 = scmp.ne.s32.totalorder %s16_s10, %s326_s18  ;;  %p332_p5 = scmp.lt.s32.totalorder %s326_s18, %s326_s18 }
   0xa   :  { %p333_p6 = por %p332_p5, %p331_p4 }
   0xc   :  { %p334_p7 = pnand %p333_p6, %p327_p3 }
   0xe   :  { %337 = shalt.err (!%p334_p7)
}
   0xf   :  { %s341_s19 = smov 128   ;;  %s342_s20 = smov 8  }
  0x10   :  { %21 = dma.hbm_to_vmem [thread:$0]  %s391_s1, 512, %s16_s10, [#allocation3], %s341_s19, %s341_s19, %s342_s20  }
  0x11   :  { %338 = dma.done.wait [#allocation3], 512  }
  0x12   :  { %339 = vsyncadd [#allocation3], 4294966784  ;;  %v343_v0 = vmov 1   ;;  %v344_v1 = vmov 0   ;;  %v28_v2 = vld [vmem:[#allocation2] sm:$0xff]  ;;  %v29_v3 = vld [vmem:[#allocation2 + $0x8] sm:$0xff] }
  0x13   :  { %304 = vset.pattern.permute.xlu1 %v343_v0  ;;  %303 = vset.pattern.permute.xlu0 %v344_v1  ;;  %v345_v4 = vmov 2   ;;  %v346_v5 = vmov 4   ;;  %v92_v6 = vld [vmem:[#allocation2 + $0x10] sm:$0xff]  ;;  %s347_s1 = smov 120   ;;  %v93_v7 = vld [vmem:[#allocation2 + $0x18] sm:$0xff]  ;;  %v348_v8 = vmov 24  }
  0x14   :  { %47 = vperm.xlu1 %304, %v28_v2   ;;  %32 = vperm.xlu0 %303, %v28_v2   ;;  %v349_v9 = vmov 32   ;;  %v220_v10 = vld [vmem:[#allocation2] sm:$0x1]  ;;  %v350_v11 = vmov 40   ;;  %v264_v14 = vld [vmem:[%s390_s0 + $0x1] ss:$0 sm:$0xff] }
  0x15   :  { %v263_v15 = vld [vmem:[%s390_s0] ss:$0 sm:$0xff]  ;;  %v265_v22 = vld [vmem:[%s390_s0 + $0x2] ss:$0 sm:$0xff]  ;;  %vm122_vm0 = vcmask 130048  }
  0x18   :  { %51 = vperm.xlu1 %304, %v29_v3   ;;  %37 = vperm.xlu0 %303, %v29_v3  }
  0x1c   :  { %306 = vset.pattern.permute.xlu1 %v345_v4  ;;  %305 = vset.pattern.permute.xlu0 %v345_v4 }
  0x1d   :  { %67 = vperm.xlu1 %306, %v29_v3   ;;  %63 = vperm.xlu0 %305, %v28_v2  }
  0x21   :  { %307 = vset.pattern.permute.xlu1 %v346_v5  ;;  %308 = vset.pattern.permute.xlu0 %v346_v5 }
  0x22   :  { %79 = vperm.xlu1 %307, %v28_v2   ;;  %83 = vperm.xlu0 %308, %v29_v3  }
  0x26   :  { %114 = vrot.lane.b32.xlu1 %v28_v2, %s347_s1  ;;  %118 = vrot.lane.b32.xlu0 %v92_v6, %s347_s1 }
  0x27   :  { %310 = vset.pattern.permute.xlu1 %v348_v8  ;;  %309 = vset.pattern.permute.xlu0 %v348_v8 }
  0x2a   :  { %116 = vrot.lane.b32.xlu1 %v29_v3, %s347_s1  ;;  %96 = vperm.xlu0 %309, %v28_v2  }
  0x2e   :  { %120 = vrot.lane.b32.xlu1 %v93_v7, %s347_s1  ;;  %111 = vperm.xlu0 %309, %v93_v7  }
  0x32   :  { %101 = vperm.xlu1 %310, %v29_v3   ;;  %312 = vset.pattern.permute.xlu0 %v349_v9 }
  0x33   :  { %226 = vperm.xlu0 %312, %v29_v3  }
  0x36   :  { %106 = vperm.xlu1 %310, %v92_v6  }
  0x37   :  { %313 = vset.pattern.permute.xlu0 %v350_v11 }
  0x38   :  { %252 = vperm.xlu0 %313, %v220_v10  }
  0x3a   :  { %311 = vset.pattern.permute.xlu1 %v349_v9 }
  0x3b   :  { %222 = vperm.xlu1 %311, %v28_v2  }
  0x3f   :  { %230 = vperm.xlu1 %311, %v92_v6  }
  0x43   :  { %234 = vperm.xlu1 %311, %v93_v7  }
  0x93   :  { %v48_v12 = vpop.permute.xlu1 %47  ;;  %v33_v13 = vpop.permute.xlu0 %32 }
  0x94   :  { %v58_v18 = vmul.f32 %v264_v14, %v48_v12  ;;  %v44_v19 = vmul.f32 %v263_v15, %v33_v13 }
  0x96   :  { %v60_v25 = vadd.f32 %v58_v18, %v44_v19 }
  0x97   :  { %v52_v16 = vpop.permute.xlu1 %51  ;;  %v38_v17 = vpop.permute.xlu0 %37 }
  0x98   :  { %v59_v20 = vmul.f32 %v264_v14, %v52_v16  ;;  %v45_v21 = vmul.f32 %v263_v15, %v38_v17 }
  0x9a   :  { %v61_v26 = vadd.f32 %v59_v20, %v45_v21 }
  0x9c   :  { %v68_v23 = vpop.permute.xlu1 %67  ;;  %v64_v24 = vpop.permute.xlu0 %63 }
  0x9d   :  { %v75_v27 = vmul.f32 %v265_v22, %v68_v23  ;;  %v74_v28 = vmul.f32 %v265_v22, %v64_v24 }
  0x9f   :  { %v76_v29 = vadd.f32 %v74_v28, %v60_v25  ;;  %v77_v30 = vadd.f32 %v75_v27, %v61_v26 }
  0xa1   :  { %v80_v31 = vpop.permute.xlu1 %79  ;;  %v84_v32 = vpop.permute.xlu0 %83 }
  0xa2   :  { %v86_v33 = vadd.f32 %v80_v31, %v76_v29  ;;  %v87_v34 = vadd.f32 %v84_v32, %v77_v30 }
  0xa4   :  { %v88_v35 = vmax.f32 %v86_v33, 0.0  ;;  %v89_v36 = vmax.f32 %v87_v34, 0.0 }
  0xa5   :  { %v115_v37 = vpop.permute.xlu1 %114  ;;  %v119_v38 = vpop.permute.xlu0 %118 }
  0xa6   :  { %v286_v39 = vpack.c.bf16 %v89_v36, %v88_v35  ;;  %280 = vmatprep.mubr.msk.f32.mxu0 %vm122_vm0, %v115_v37  ;;  %283 = vmatprep.mubr.msk.f32.mxu1 %vm122_vm0, %v119_v38 }
  0xa8   :  { %287 = vmatprep.subr.bf16.mxu0 %v286_v39  ;;  %290 = vmatprep.subr.bf16.mxu1 %v286_v39 }
  0xa9   :  { %v117_v40 = vpop.permute.xlu1 %116  ;;  %289 = vmatpush3.bf16.msra.mxu0 %v286_v39  ;;  %291 = vmatpush3.bf16.msra.mxu1 %v286_v39  ;;  %v97_v44 = vpop.permute.xlu0 %96 }
  0xac   :  { %281 = vmatmul.mubr.msk.f32.vlgmr.msra.gmra.mrb[0].mxu0 %vm122_vm0, %v117_v40 }
  0xad   :  { %v121_v41 = vpop.permute.xlu1 %120  ;;  %v112_v46 = vpop.permute.xlu0 %111 }
  0xae   :  { %284 = vmatmul.mubr.msk.f32.vlgmr.msra.gmra.mrb[0].mxu1 %vm122_vm0, %v121_v41 }
  0xb1   :  { %v102_v42 = vpop.permute.xlu1 %101 }
  0xb2   :  { %v227_v52 = vpop.permute.xlu0 %226 }
  0xb5   :  { %v107_v43 = vpop.permute.xlu1 %106 }
  0xb7   :  { %v253_v10 = vpop.permute.xlu0 %252 }
  0xba   :  { %v223_v45 = vpop.permute.xlu1 %222 }
  0xbe   :  { %v231_v53 = vpop.permute.xlu1 %230 }
  0xc2   :  { %v235_v1 = vpop.permute.xlu1 %234 }
 0x17f   :  { %v282_v47 = vpop.f32.mrb[0].mxu0 }
 0x180   :  { %v203_v48 = vadd.f32 %v282_v47, %v102_v42  ;;  %v197_v49 = vpop.f32.mrb[1].mxu0 }
 0x181   :  { %v198_v50 = vadd.f32 %v197_v49, %v97_v44  ;;  %v285_v51 = vpop.f32.mrb[0].mxu1 }
 0x182   :  { %v217_v54 = vmax.f32 %v203_v48, 0.0  ;;  %v213_v55 = vadd.f32 %v285_v51, %v112_v46  ;;  %v207_v56 = vpop.f32.mrb[1].mxu1 }
 0x183   :  { %v216_v57 = vmax.f32 %v198_v50, 0.0  ;;  %v208_v58 = vadd.f32 %v207_v56, %v107_v43 }
 0x184   :  { %v238_v59 = vmul.f32 %v227_v52, %v217_v54  ;;  %v219_v61 = vmax.f32 %v213_v55, 0.0 }
 0x185   :  { %v237_v60 = vmul.f32 %v223_v45, %v216_v57  ;;  %v218_v62 = vmax.f32 %v208_v58, 0.0 }
 0x186   :  { %v240_v2 = vmul.f32 %v235_v1, %v219_v61 }
 0x187   :  { %v239_v63 = vmul.f32 %v231_v53, %v218_v62  ;;  %v241_v0 = vadd.f32 %v238_v59, %v237_v60 }
 0x189   :  { %v242_v3 = vadd.f32 %v241_v0, %v239_v63 }
 0x18b   :  { %v243_v4 = vadd.f32 %v242_v3, %v240_v2 }
 0x18d   :  { %v244_v5 = vrot.slane %v243_v4, 4 }
 0x18f   :  { %v245_v6 = vadd.f32 %v244_v5, %v243_v4 }
 0x191   :  { %v246_v7 = vrot.slane %v245_v6, 2 }
 0x193   :  { %v247_v8 = vadd.f32 %v246_v7, %v245_v6 }
 0x195   :  { %v248_v9 = vrot.slane %v247_v8, 1 }
 0x197   :  { %v249_v11 = vadd.f32 %v248_v9, %v247_v8 }
 0x199   :  { %v255_v12 = vadd.f32 %v253_v10, %v249_v11 }
 0x19b   :  { %314 = vtanh.f32 %v255_v12 }
 0x1a5   :  { %v315_v13 = vpop.eup %314 }
 0x1a6   :  { %257 = vst [vmem:[%s392_s2] sm:$0x1] %v315_v13 }
 0x1a7   :  { %262 = vsyncpa [#allocation3], 1 }

</bundles_post_ra>
